<compile_context>
chip_gen: v7x
topology: tpu7x:2x2x1
jax: 0.10.0
libtpu: 0.0.40
codegen_flags: <defaults>
</compile_context>

<pallas_src>
import functools

import jax
import jax.numpy as jnp
from jax import lax
from jax.experimental import pallas as pl
from jax.experimental.pallas import tpu as pltpu

_EPS = 1e-16  # eps used by contrastyou's Entropy criterion


# --------------------------------------------------------------------------
# Generation-aware tuning knobs (conservative defaults are v5e-safe).
# --------------------------------------------------------------------------
def _tpu_config():
    kind = ""
    try:
        kind = jax.devices()[0].device_kind.lower()
    except Exception:
        pass
    cfg = dict(
        vmem_budget_bytes=12 * 1024 * 1024,   # total working set (inputs + temps)
        max_tile_rows=4096,
        vmem_limit_bytes=None,                # default scoped VMEM (v5e: 16 MiB)
        num_shards=1,                         # TensorCores to shard row tiles over
        use_bf16_log=False,                   # v5e has no bf16 EUP -> keep f32 log
    )
    if "v6" in kind:
        # v6e: 128 MiB physical VMEM, 1 TC.  Bigger tiles; keep the exact f32
        # log by default (bf16-log only once EUP saturation is confirmed).
        cfg.update(vmem_budget_bytes=48 * 1024 * 1024, max_tile_rows=16384,
                   vmem_limit_bytes=64 * 1024 * 1024)
    elif "v7" in kind or "7x" in kind:
        # v7x: 64 MiB physical VMEM, 2 TCs, 3.2 TB/s HBM -> shard across cores,
        # keep the working set well under VMEM, halve EUP work with bf16 log.
        cfg.update(vmem_budget_bytes=36 * 1024 * 1024, max_tile_rows=16384,
                   vmem_limit_bytes=48 * 1024 * 1024, num_shards=2,
                   use_bf16_log=True)
    return cfg


_CFG_CACHE = None


def _get_cfg():
    global _CFG_CACHE
    if _CFG_CACHE is None:
        _CFG_CACHE = _tpu_config()
    return _CFG_CACHE


# --------------------------------------------------------------------------
# Kernel: streams row tiles, keeps per-input / per-core (8, w) partial sums.
# --------------------------------------------------------------------------
def _imsat_partials_kernel(*refs, num_inputs, tile_rows, valid_rows,
                           steps_per_shard, use_bf16_log):
    """refs = (x_0..x_{P-1}, ent_0..ent_{P-1}, col_0..col_{P-1}).

    ent_i accumulates sum_rows x*log(x+eps) per (sublane, lane) slot.
    col_i accumulates sum_rows x            per (sublane, lane) slot.
    Output blocks are grid-resident along the streaming axis (same block per
    core for every step); finalization happens in the wrapper.
    """
    x_refs = refs[:num_inputs]
    ent_refs = refs[num_inputs:2 * num_inputs]
    col_refs = refs[2 * num_inputs:3 * num_inputs]

    c = pl.program_id(0)   # core/shard axis  ("parallel")
    i = pl.program_id(1)   # streaming reduction axis ("arbitrary")

    @pl.when(i == 0)
    def _init():
        for e, m in zip(ent_refs, col_refs):
            e[...] = jnp.zeros_like(e)
            m[...] = jnp.zeros_like(m)

    # Ragged-tail handling (no wrapper-side row padding): the last tile - and
    # any clamped duplicate tile on an overhang shard - contains rows past the
    # end of the array whose VMEM contents are undefined.  Zero them BEFORE the
    # log/multiply (garbage could be negative or NaN).  The mask uses the
    # *logical* (unclamped) block index, so duplicated tiles contribute 0.
    # Applied unconditionally: a compare+select per vreg is free VPU filler in
    # this EUP/DMA-bound kernel and avoids duplicating the body under pl.when.
    w = x_refs[0].shape[-1]
    start = (c * steps_per_shard + i) * tile_rows
    row_ids = lax.broadcasted_iota(jnp.int32, (tile_rows, w), 0) + start
    valid = row_ids < valid_rows

    for x_ref, e, m in zip(x_refs, ent_refs, col_refs):
        x = jnp.where(valid, x_ref[...].astype(jnp.float32), 0.0)
        arg = x + _EPS                                   # +eps kept in f32
        if use_bf16_log:
            # v7x/v6e trick: the single EUP slot is the bottleneck; a bf16 log
            # roughly doubles transcendental throughput.  Multiply/accumulate
            # stay in f32.
            logx = jnp.log(arg.astype(jnp.bfloat16)).astype(jnp.float32)
        else:
            logx = jnp.log(arg)
        # (T, w) -> (T//8, 8, w) is the native sublane grouping (free view);
        # summing axis 0 is pure VPU vreg adds -> no per-step cross-sublane
        # XLU reduce.  The final 8-row fold happens once in the wrapper.
        xl = (x * logx).reshape(tile_rows // 8, 8, w)
        xs = x.reshape(tile_rows // 8, 8, w)
        e[...] += jnp.sum(xl, axis=0)[None]
        m[...] += jnp.sum(xs, axis=0)[None]


# --------------------------------------------------------------------------
# Wrapper: packing, tiling, pallas_call, finalization.
# --------------------------------------------------------------------------
def _prep_and_pack(x, kp, group):
    """Pack (N, K) into a lane-dense (rows, group*kp) view.

    - zero-pads K -> kp (next power of two) when K does not divide 128,
    - zero-pads at most (group - 1) rows so the row-major reshape to lane
      width 128 is valid (zero rows/columns contribute exactly 0),
    - does NOT pad to a tile multiple: the ragged tail is masked in-kernel.
    """
    n, k = x.shape
    if group == 1 and kp == k:
        return x                                  # natural layout (K >= 128)
    pad_cols = kp - k
    pad_rows = (-n) % group
    if pad_cols or pad_rows:
        x = jnp.pad(x, ((0, pad_rows), (0, pad_cols)))
    return x.reshape(-1, group * kp)


def _imsat_losses(xs, lamda, cfg):
    """imsat_loss for each array in `xs`, one fused pallas_call."""
    num_inputs = len(xs)
    n, k = xs[0].shape
    for x in xs:
        assert x.ndim == 2 and x.shape == (n, k), x.shape
    # TODO(synk): the PyTorch module's simplex() assertion + loguru logging are
    # host-side checks, not kernel compute; omitted here.

    # Lane-dense packing: with small class counts only K of 128 lanes would be
    # live; regroup 128//kp samples per packed row so VPU/EUP run at (near)
    # full occupancy.  kp is the next power of two >= K (divides 128).
    if k < 128:
        kp = max(1, pl.next_power_of_2(k))
        group = 128 // kp
    else:
        kp, group = k, 1                          # K >= 128: full-K blocks

    xs_prep = [_prep_and_pack(x, kp, group) for x in xs]
    m_rows, w = xs_prep[0].shape                  # w = group*kp (=128) or K

    itemsize = jnp.dtype(xs_prep[0].dtype).itemsize
    lane_w = pl.cdiv(w, 128) * 128                # VMEM lanes padded to 128
    in_row_bytes = lane_w * itemsize
    f32_row_bytes = lane_w * 4
    # Peak VMEM per tile row: double-buffered input tiles for every operand
    # plus ~6 f32-sized in-kernel temporaries (iota/mask/log/product) for the
    # operand currently being processed.
    per_row_cost = num_inputs * 2 * in_row_bytes + 6 * f32_row_bytes
    tile_rows = cfg["vmem_budget_bytes"] // max(per_row_cost, 1)
    tile_rows = min(tile_rows, cfg["max_tile_rows"], pl.cdiv(m_rows, 8) * 8)
    tile_rows = max(8, (tile_rows // 8) * 8)      # sublane multiple

    steps_total = pl.cdiv(m_rows, tile_rows)
    num_shards = cfg["num_shards"] if steps_total >= 2 else 1
    steps_per_shard = pl.cdiv(steps_total, num_shards)
    last_block = steps_total - 1

    def in_map(c, i):
        # Clamp so an overhang shard never issues a fully out-of-bounds DMA;
        # the kernel's row mask (built from the unclamped index) zeroes the
        # duplicated tile's contribution.
        return (jnp.minimum(c * steps_per_shard + i, last_block), 0)

    in_spec = pl.BlockSpec((tile_rows, w), in_map)
    out_spec = pl.BlockSpec((1, 8, w), lambda c, i: (c, 0, 0))
    out_shapes = tuple(jax.ShapeDtypeStruct((num_shards, 8, w), jnp.float32)
                       for _ in range(2 * num_inputs))

    total_elems = num_inputs * m_rows * w
    compiler_kwargs = dict(dimension_semantics=("parallel", "arbitrary"))
    if cfg["vmem_limit_bytes"] is not None:
        compiler_kwargs["vmem_limit_bytes"] = int(cfg["vmem_limit_bytes"])

    outs = pl.pallas_call(
        functools.partial(
            _imsat_partials_kernel,
            num_inputs=num_inputs, tile_rows=tile_rows, valid_rows=m_rows,
            steps_per_shard=steps_per_shard, use_bf16_log=cfg["use_bf16_log"]),
        out_shape=out_shapes,
        grid_spec=pltpu.PrefetchScalarGridSpec(
            num_scalar_prefetch=0,
            grid=(num_shards, steps_per_shard),
            in_specs=[in_spec] * num_inputs,
            out_specs=tuple([out_spec] * (2 * num_inputs)),
        ),
        compiler_params=pltpu.CompilerParams(**compiler_kwargs),
        cost_estimate=pl.CostEstimate(
            flops=int(5 * total_elems),
            transcendentals=int(total_elems),
            bytes_accessed=int(total_elems * itemsize
                               + 2 * num_inputs * num_shards * 8 * w * 4),
        ),
    )(*xs_prep)

    ent_sums = outs[:num_inputs]
    col_sums = outs[num_inputs:]

    # Finalize (tiny, <= num_shards*8*w elements per input) in plain JAX:
    # fold cores + sublanes, fold packed lanes back onto the K classes,
    # normalize by the *true* N, apply the log to the marginal.
    n_f = float(n)
    losses = []
    for e, cs in zip(ent_sums, col_sums):
        cond_ent = -jnp.sum(e) / n_f                                  # mean_n H(x_n)
        col = jnp.sum(cs, axis=(0, 1)).reshape(-1, kp).sum(axis=0)[:k]
        margin = col / n_f
        marg_ent = -jnp.sum(margin * jnp.log(margin + _EPS))
        losses.append(cond_ent - lamda * marg_ent)
    return losses


@functools.partial(jax.jit, static_argnames=("lamda",))
def _imsat_forward_jit(x_out, x_tf_out, lamda):
    cfg = _get_cfg()
    if x_tf_out is None:
        return _imsat_losses([x_out], lamda, cfg)[0]
    la, lb = _imsat_losses([x_out, x_tf_out], lamda, cfg)
    return 0.5 * (la + lb)


def imsat_forward(x_out, x_tf_out=None, lamda=1.0):
    """Equivalent of IMSATLoss.forward (packing + kernel + finalize in one jit)."""
    return _imsat_forward_jit(x_out, x_tf_out, lamda=float(lamda))


# ---- pure-JAX reference (mirrors the PyTorch math) -------------------------
def _imsat_loss_ref(x, lamda=1.0):
    x = x.astype(jnp.float32)
    cond_ent = jnp.mean(-jnp.sum(x * jnp.log(x + _EPS), axis=1))
    margin = jnp.mean(x, axis=0)
    marg_ent = -jnp.sum(margin * jnp.log(margin + _EPS))
    return cond_ent - lamda * marg_ent


def _imsat_forward_ref(x_out, x_tf_out=None, lamda=1.0):
    if x_tf_out is None:
        return _imsat_loss_ref(x_out, lamda)
    return 0.5 * (_imsat_loss_ref(x_out, lamda) + _imsat_loss_ref(x_tf_out, lamda))


if __name__ == "__main__":
    cfg = _get_cfg()
    key = jax.random.PRNGKey(0)
    k1, k2, k3, k4 = jax.random.split(key, 4)

    # (N, K): N samples, each a simplex over K classes (module's 2D convention)
    N, K = 16, 8
    x_out = jax.nn.softmax(jax.random.normal(k1, (N, K), dtype=jnp.float32), axis=-1)
    x_tf_out = jax.nn.softmax(jax.random.normal(k2, (N, K), dtype=jnp.float32), axis=-1)

    lamda = 1.0
    loss_id = imsat_forward(x_out, None, lamda=lamda)          # identity-input branch
    loss_pair = imsat_forward(x_out, x_tf_out, lamda=lamda)    # two-input fused branch

    # odd shape: K does not divide 128, N not a multiple of the packing group
    N2, K2 = 13, 10
    x_odd = jax.nn.softmax(jax.random.normal(k3, (N2, K2), dtype=jnp.float32), axis=-1)
    loss_odd = imsat_forward(x_odd, None, lamda=0.5)

    # forced-config path: tiny tiles + 2 shards to exercise multi-step streaming,
    # the clamped overhang block and the in-kernel ragged-tail mask (bf16 input).
    cfg_small = dict(vmem_budget_bytes=1 << 20, max_tile_rows=8,
                     vmem_limit_bytes=None, num_shards=2, use_bf16_log=False)
    N3, K3 = 1100, 8
    x_big = jax.nn.softmax(
        jax.random.normal(k4, (N3, K3), dtype=jnp.float32), axis=-1
    ).astype(jnp.bfloat16)
    loss_big = _imsat_losses([x_big], 0.7, cfg_small)[0]

    jax.block_until_ready((loss_id, loss_pair, loss_odd, loss_big))

    ref_id = _imsat_forward_ref(x_out, None, lamda=lamda)
    ref_pair = _imsat_forward_ref(x_out, x_tf_out, lamda=lamda)
    ref_odd = _imsat_forward_ref(x_odd, None, lamda=0.5)
    ref_big = _imsat_loss_ref(x_big, 0.7)

    # bf16-log (auto-enabled on v7x only) trades ~1e-3 absolute accuracy for
    # EUP throughput; use an appropriate tolerance in that case.
    tol = (dict(atol=2e-2, rtol=2e-2) if cfg["use_bf16_log"]
           else dict(atol=1e-5, rtol=1e-5))
    assert jnp.allclose(loss_id, ref_id, **tol), (loss_id, ref_id)
    assert jnp.allclose(loss_pair, ref_pair, **tol), (loss_pair, ref_pair)
    assert jnp.allclose(loss_odd, ref_odd, **tol), (loss_odd, ref_odd)
    assert jnp.allclose(loss_big, ref_big, atol=1e-4, rtol=1e-4), (loss_big, ref_big)

    print("KERNEL_OK")
</pallas_src>

<mosaic_0001>
module attributes {stable_mosaic.version = 11 : i64} {
  func.func @_imsat_partials_kernel(%arg0: i32, %arg1: i32, %arg2: memref<8x128xf32, #tpu.memory_space<vmem>>, %arg3: memref<1x8x128xf32, #tpu.memory_space<vmem>>, %arg4: memref<1x8x128xf32, #tpu.memory_space<vmem>>) attributes {dimension_semantics = [#tpu.dimension_semantics<parallel>, #tpu.dimension_semantics<arbitrary>], iteration_bounds = array<i64: 1, 1>, scalar_prefetch = 0 : i64, scratch_operands = 0 : i64, tpu.core_type = #tpu.core_type<tc>, window_params = [{transform_indices = @transform_0, window_bounds = array<i64: 8, 128>}, {transform_indices = @transform_1, window_bounds = array<i64: 1, 8, 128>}, {transform_indices = @transform_2, window_bounds = array<i64: 1, 8, 128>}]} {
    %c0_i32 = arith.constant 0 : i32
    %0 = arith.cmpi eq, %arg1, %c0_i32 : i32
    %1 = arith.extui %0 : i1 to i32
    %c0_i32_0 = arith.constant 0 : i32
    %2 = arith.cmpi ne, %1, %c0_i32_0 : i32
    scf.if %2 {
      %cst_18 = arith.constant 0.000000e+00 : f32
      %30 = vector.broadcast %cst_18 : f32 to vector<1x8x128xf32>
      %c0_19 = arith.constant 0 : index
      %c0_20 = arith.constant 0 : index
      %c0_21 = arith.constant 0 : index
      %31 = vector.load %arg3[%c0_19, %c0_20, %c0_21] : memref<1x8x128xf32, #tpu.memory_space<vmem>>, vector<1x8x128xf32>
      tpu.vector_store %arg3[%c0_19, %c0_20, %c0_21], %30 {strides = array<i32>} : memref<1x8x128xf32, #tpu.memory_space<vmem>>, vector<1x8x128xf32>,
      %cst_22 = arith.constant 0.000000e+00 : f32
      %32 = vector.broadcast %cst_22 : f32 to vector<1x8x128xf32>
      %c0_23 = arith.constant 0 : index
      %c0_24 = arith.constant 0 : index
      %c0_25 = arith.constant 0 : index
      %33 = vector.load %arg4[%c0_23, %c0_24, %c0_25] : memref<1x8x128xf32, #tpu.memory_space<vmem>>, vector<1x8x128xf32>
      tpu.vector_store %arg4[%c0_23, %c0_24, %c0_25], %32 {strides = array<i32>} : memref<1x8x128xf32, #tpu.memory_space<vmem>>, vector<1x8x128xf32>,
    } else {
    }
    %c1_i32 = arith.constant 1 : i32
    %3 = arith.muli %arg0, %c1_i32 : i32
    %4 = arith.addi %3, %arg1 : i32
    %c8_i32 = arith.constant 8 : i32
    %5 = arith.muli %4, %c8_i32 : i32
    %6 = tpu.iota {dimensions = array<i32: 0>} : vector<8x128xi32>
    %7 = vector.broadcast %5 : i32 to vector<8x128xi32>
    %8 = arith.addi %6, %7 : vector<8x128xi32>
    %c1_i32_1 = arith.constant 1 : i32
    %9 = vector.broadcast %c1_i32_1 : i32 to vector<8x128xi32>
    %10 = arith.cmpi slt, %8, %9 : vector<8x128xi32>
    %c0 = arith.constant 0 : index
    %c0_2 = arith.constant 0 : index
    %11 = vector.load %arg2[%c0, %c0_2] : memref<8x128xf32, #tpu.memory_space<vmem>>, vector<8x128xf32>
    %cst = arith.constant 0.000000e+00 : f32
    %12 = vector.broadcast %cst : f32 to vector<8x128xf32>
    %13 = arith.select %10, %11, %12 : vector<8x128xi1>, vector<8x128xf32>
    %cst_3 = arith.constant 1.000000e-16 : f32
    %14 = vector.broadcast %cst_3 : f32 to vector<8x128xf32>
    %15 = arith.addf %13, %14 : vector<8x128xf32>
    %16 = math.log %15 : vector<8x128xf32>
    %17 = arith.mulf %13, %16 : vector<8x128xf32>
    %18 = vector.shape_cast %17 : vector<8x128xf32> to vector<1x8x128xf32>
    %19 = vector.shape_cast %13 : vector<8x128xf32> to vector<1x8x128xf32>
    %c0_4 = arith.constant 0 : index
    %c0_5 = arith.constant 0 : index
    %c0_6 = arith.constant 0 : index
    %20 = vector.load %arg3[%c0_4, %c0_5, %c0_6] : memref<1x8x128xf32, #tpu.memory_space<vmem>>, vector<1x8x128xf32>
    %cst_7 = arith.constant dense<0.000000e+00> : vector<8x128xf32>
    %21 = vector.multi_reduction <add>, %18, %cst_7 [0] : vector<1x8x128xf32> to vector<8x128xf32>
    %22 = vector.shape_cast %21 : vector<8x128xf32> to vector<1x8x128xf32>
    %23 = arith.addf %20, %22 : vector<1x8x128xf32>
    %c0_8 = arith.constant 0 : index
    %c0_9 = arith.constant 0 : index
    %c0_10 = arith.constant 0 : index
    %24 = vector.load %arg3[%c0_8, %c0_9, %c0_10] : memref<1x8x128xf32, #tpu.memory_space<vmem>>, vector<1x8x128xf32>
    tpu.vector_store %arg3[%c0_8, %c0_9, %c0_10], %23 {strides = array<i32>} : memref<1x8x128xf32, #tpu.memory_space<vmem>>, vector<1x8x128xf32>,
    %c0_11 = arith.constant 0 : index
    %c0_12 = arith.constant 0 : index
    %c0_13 = arith.constant 0 : index
    %25 = vector.load %arg4[%c0_11, %c0_12, %c0_13] : memref<1x8x128xf32, #tpu.memory_space<vmem>>, vector<1x8x128xf32>
    %cst_14 = arith.constant dense<0.000000e+00> : vector<8x128xf32>
    %26 = vector.multi_reduction <add>, %19, %cst_14 [0] : vector<1x8x128xf32> to vector<8x128xf32>
    %27 = vector.shape_cast %26 : vector<8x128xf32> to vector<1x8x128xf32>
    %28 = arith.addf %25, %27 : vector<1x8x128xf32>
    %c0_15 = arith.constant 0 : index
    %c0_16 = arith.constant 0 : index
    %c0_17 = arith.constant 0 : index
    %29 = vector.load %arg4[%c0_15, %c0_16, %c0_17] : memref<1x8x128xf32, #tpu.memory_space<vmem>>, vector<1x8x128xf32>
    tpu.vector_store %arg4[%c0_15, %c0_16, %c0_17], %28 {strides = array<i32>} : memref<1x8x128xf32, #tpu.memory_space<vmem>>, vector<1x8x128xf32>,
    return
  }
  func.func @transform_0(%arg0: i32, %arg1: i32) -> (i32, i32) {
    %c1_i32 = arith.constant 1 : i32
    %0 = arith.muli %arg0, %c1_i32 : i32
    %1 = arith.addi %0, %arg1 : i32
    %c0_i32 = arith.constant 0 : i32
    %2 = arith.minsi %1, %c0_i32 : i32
    %c0_i32_0 = arith.constant 0 : i32
    %c0_i32_1 = arith.constant 0 : i32
    return %2, %c0_i32_0 : i32, i32
  }
  func.func @transform_1(%arg0: i32, %arg1: i32) -> (i32, i32, i32) {
    %c0_i32 = arith.constant 0 : i32
    %c0_i32_0 = arith.constant 0 : i32
    %c0_i32_1 = arith.constant 0 : i32
    return %arg0, %c0_i32, %c0_i32_0 : i32, i32, i32
  }
  func.func @transform_2(%arg0: i32, %arg1: i32) -> (i32, i32, i32) {
    %c0_i32 = arith.constant 0 : i32
    %c0_i32_0 = arith.constant 0 : i32
    %c0_i32_1 = arith.constant 0 : i32
    return %arg0, %c0_i32, %c0_i32_0 : i32, i32, i32
  }
}

</mosaic_0001>

<bundles_post_ra>
// kernel: _imsat_forward_jit.1
= control target key start
LH: loop header
LB: loop body
LE: loop exit
PB: predicated region body
PF: predicated region fallthrough
CT: control target
= control target key end

     0   :  { %s115_s0 = inlined_call_operand.vmem [shape: f32[1,128], index: 0, kind: input, shape index: {}]   ;;  %s116_s2 = inlined_call_operand.vmem [shape: f32[1,8,128], index: 2, kind: output, shape index: {1}]   ;;  %s117_s1 = inlined_call_operand.vmem [shape: f32[1,8,128], index: 1, kind: output, shape index: {0}]  }
   0x1   :  { %v87_v0 = vld [vmem:[%s115_s0] sm:$0x1] }
   0x2   :  { %v64_v1 = vadd.f32 1e-16, %v87_v0  ;;  %75 = vst [vmem:[%s116_s2] sm:$0xff] %v87_v0 }
   0x4   :  { %89 = vlog2.f32 %v64_v1 }
   0xe   :  { %v90_v2 = vpop.eup %89 }
   0xf   :  { %v66_v3 = vmul.f32 0.6931472, %v90_v2 }
  0x11   :  { %v67_v4 = vmul.f32 %v87_v0, %v66_v3 }
  0x13   :  { %71 = vst [vmem:[%s117_s1] sm:$0xff] %v67_v4 }

</bundles_post_ra>
